<compile_context>
chip_gen: v5e
topology: v5e:2x2
jax: 0.10.0
libtpu: 0.0.40
codegen_flags: <defaults>
</compile_context>

<pallas_src>
import functools

import jax
import jax.numpy as jnp
from jax import lax
from jax.experimental import pallas as pl
from jax.experimental.pallas import tpu as pltpu


# ---------------------------------------------------------------------------
# generation-aware sizing
# ---------------------------------------------------------------------------
@functools.lru_cache(maxsize=None)
def _vmem_capacity_bytes():
    try:
        return int(pltpu.get_tpu_info().vmem_capacity_bytes)
    except Exception:
        # Conservative default = smallest per-core VMEM (v7x, 64 MiB / TensorCore).
        return 64 * 1024 * 1024


def _vmem_limit_bytes():
    # ~80% of physical VMEM leaves headroom for compiler-internal scratch and the
    # double-buffered I/O blocks (review: don't pin the limit at the full 64 MiB on v7x).
    return int(_vmem_capacity_bytes() * 0.8)


def _tile_targets():
    # (sequence tile, MLP hidden tile): bigger resident tiles on v5e/v6e (128 MiB VMEM),
    # smaller streaming tiles on v7x (64 MiB / TensorCore).
    if _vmem_capacity_bytes() >= 96 * 1024 * 1024:
        return 512, 2048
    return 256, 512


def _fit_tile(dim, target):
    # Use `target` only when it evenly tiles `dim`; otherwise fall back to the full
    # extent (keeps the "(8,128)-divisible OR equal-to-full-dim" BlockSpec rule happy).
    return target if (dim > target and dim % target == 0) else dim


def _seq_tile(L):
    tq = _tile_targets()[0]
    if L <= tq:
        return L, L                      # no tiling / no padding needed
    return tq, ((L + tq - 1) // tq) * tq


def _const_spec(arr):
    # Full-extent block with a constant index across the whole grid (weights / LN params).
    n = arr.ndim
    return pl.BlockSpec(arr.shape, lambda *_: (0,) * n)


# ---------------------------------------------------------------------------
# small in-kernel helper (also reused in plain XLA for the tiny head)
# ---------------------------------------------------------------------------
def _layer_norm(x, g, b, eps=1e-5):
    mu = jnp.mean(x, axis=-1, keepdims=True)
    var = jnp.mean(jnp.square(x - mu), axis=-1, keepdims=True)
    return (x - mu) * lax.rsqrt(var + eps) * g + b


# ---------------------------------------------------------------------------
# kernel: tiled matmul with f32 VMEM accumulator (patch-embedding Conv2d-as-GEMM)
# ---------------------------------------------------------------------------
def _matmul_kernel(a_ref, b_ref, o_ref, acc_ref):
    @pl.when(pl.program_id(2) == 0)
    def _():
        acc_ref[...] = jnp.zeros_like(acc_ref)
    acc_ref[...] += jnp.dot(a_ref[...], b_ref[...], preferred_element_type=jnp.float32)
    o_ref[...] = acc_ref[...].astype(o_ref.dtype)


def pallas_matmul(a, b, *, tm=256, tn=256, tk=512, out_dtype=jnp.float32):
    M, K = a.shape
    K2, N = b.shape
    assert K == K2
    tm, tn, tk = _fit_tile(M, tm), _fit_tile(N, tn), _fit_tile(K, tk)
    return pl.pallas_call(
        _matmul_kernel,
        out_shape=jax.ShapeDtypeStruct((M, N), out_dtype),
        grid=(M // tm, N // tn, K // tk),
        in_specs=[pl.BlockSpec((tm, tk), lambda i, j, k: (i, k)),
                  pl.BlockSpec((tk, tn), lambda i, j, k: (k, j))],
        out_specs=pl.BlockSpec((tm, tn), lambda i, j, k: (i, j)),
        scratch_shapes=[pltpu.VMEM((tm, tn), jnp.float32)],
        compiler_params=pltpu.CompilerParams(
            dimension_semantics=("parallel", "parallel", "arbitrary"),
            vmem_limit_bytes=_vmem_limit_bytes()),
    )(a, b)


# ---------------------------------------------------------------------------
# kernel: ln_1 + fused QKV projection, gridded over (batch, L-tiles)
# (first layer variant additionally fuses pos-embed add + ln_pre)
# ---------------------------------------------------------------------------
def _qkv_kernel(x_ref, ln1g_ref, ln1b_ref, wqkv_ref, bqkv_ref, qkv_ref):
    h = _layer_norm(x_ref[...], ln1g_ref[...], ln1b_ref[...])
    qkv = jnp.dot(h.astype(jnp.bfloat16), wqkv_ref[...],
                  preferred_element_type=jnp.float32) + bqkv_ref[...]
    qkv_ref[...] = qkv.astype(qkv_ref.dtype)


def _pre_qkv_kernel(tok_ref, pos_ref, lnpg_ref, lnpb_ref, ln1g_ref, ln1b_ref,
                    wqkv_ref, bqkv_ref, x_ref, qkv_ref):
    x = _layer_norm(tok_ref[...] + pos_ref[...], lnpg_ref[...], lnpb_ref[...])
    x_ref[...] = x                                           # residual stream (ln_pre output)
    h = _layer_norm(x, ln1g_ref[...], ln1b_ref[...])
    qkv = jnp.dot(h.astype(jnp.bfloat16), wqkv_ref[...],
                  preferred_element_type=jnp.float32) + bqkv_ref[...]
    qkv_ref[...] = qkv.astype(qkv_ref.dtype)


def qkv_proj(x, blk, tq, pre=None):
    B, L_pad, D = x.shape
    nL = L_pad // tq
    wqkv, bqkv = blk['wqkv'], blk['bqkv']
    threeD = wqkv.shape[1]
    cparams = pltpu.CompilerParams(dimension_semantics=("parallel", "parallel"),
                                   vmem_limit_bytes=_vmem_limit_bytes())
    tok_spec = pl.BlockSpec((None, tq, D), lambda b, l: (b, l, 0))
    qkv_spec = pl.BlockSpec((None, tq, threeD), lambda b, l: (b, l, 0))
    qkv_shape = jax.ShapeDtypeStruct((B, L_pad, threeD), jnp.bfloat16)

    if pre is None:
        return pl.pallas_call(
            _qkv_kernel,
            out_shape=qkv_shape,
            grid=(B, nL),
            in_specs=[tok_spec, _const_spec(blk['ln1_g']), _const_spec(blk['ln1_b']),
                      _const_spec(wqkv), _const_spec(bqkv)],
            out_specs=qkv_spec,
            compiler_params=cparams,
        )(x, blk['ln1_g'], blk['ln1_b'], wqkv, bqkv)

    pos, lnp_g, lnp_b = pre
    return pl.pallas_call(
        _pre_qkv_kernel,
        out_shape=(jax.ShapeDtypeStruct((B, L_pad, D), jnp.float32), qkv_shape),
        grid=(B, nL),
        in_specs=[tok_spec,
                  pl.BlockSpec((tq, D), lambda b, l: (l, 0)),
                  _const_spec(lnp_g), _const_spec(lnp_b),
                  _const_spec(blk['ln1_g']), _const_spec(blk['ln1_b']),
                  _const_spec(wqkv), _const_spec(bqkv)],
        out_specs=(tok_spec, qkv_spec),
        compiler_params=cparams,
    )(x, pos, lnp_g, lnp_b, blk['ln1_g'], blk['ln1_b'], wqkv, bqkv)


# ---------------------------------------------------------------------------
# kernel: attention + out-projection + residual, gridded over (batch, q-tiles)
# ---------------------------------------------------------------------------
def _attn_kernel(x_ref, qkv_ref, wo_ref, bo_ref, o_ref, ctx_ref,
                 *, n_head, head_dim, L_valid, q_tiled):
    bf16 = jnp.bfloat16
    tq, D = x_ref.shape
    L_pad = qkv_ref.shape[0]
    if q_tiled:
        row0 = pl.multiple_of(pl.program_id(1) * tq, tq)
    for h in range(n_head):                                  # short static head loop
        lo = h * head_dim
        if q_tiled:
            q_h = qkv_ref[pl.ds(row0, tq), lo:lo + head_dim]       # [tq, dh]  bf16
        else:
            q_h = qkv_ref[:, lo:lo + head_dim]
        k_h = qkv_ref[:, D + lo:D + lo + head_dim]                 # [L_pad, dh]
        v_h = qkv_ref[:, 2 * D + lo:2 * D + lo + head_dim]         # [L_pad, dh]
        # NOTE: contraction K = head_dim under-fills the 256-wide MXU; inherent to
        # attention -- the well-shaped QKV / out-proj / MLP GEMMs dominate FLOPs.
        s = jnp.einsum('qd,kd->qk', q_h, k_h,
                       preferred_element_type=jnp.float32)         # [tq, L_pad] f32
        if L_valid < L_pad:                                        # mask padded key columns
            s = jnp.where(lax.broadcasted_iota(jnp.int32, s.shape, 1) < L_valid, s, -1e30)
        s = s - jnp.max(s, axis=-1, keepdims=True)
        p = jnp.exp(s)
        p = p * pl.reciprocal(jnp.sum(p, axis=-1, keepdims=True), approx=True)
        # write this head's context at its lane offset (no [H, L, dh] transpose/relayout)
        ctx_ref[:, lo:lo + head_dim] = jnp.dot(p.astype(bf16), v_h,
                                               preferred_element_type=jnp.float32)
    attn = jnp.dot(ctx_ref[...].astype(bf16), wo_ref[...],
                   preferred_element_type=jnp.float32) + bo_ref[...]
    o_ref[...] = x_ref[...] + attn                                 # residual 1


def attention(x, qkv, blk, n_head, tq, L_valid):
    B, L_pad, D = x.shape
    nQ = L_pad // tq
    kernel = functools.partial(_attn_kernel, n_head=n_head, head_dim=D // n_head,
                               L_valid=L_valid, q_tiled=nQ > 1)
    return pl.pallas_call(
        kernel,
        out_shape=jax.ShapeDtypeStruct((B, L_pad, D), jnp.float32),
        grid=(B, nQ),
        in_specs=[pl.BlockSpec((None, tq, D), lambda b, q: (b, q, 0)),
                  pl.BlockSpec((None, L_pad, 3 * D), lambda b, q: (b, 0, 0)),
                  _const_spec(blk['wo']), _const_spec(blk['bo'])],
        out_specs=pl.BlockSpec((None, tq, D), lambda b, q: (b, q, 0)),
        scratch_shapes=[pltpu.VMEM((tq, D), jnp.float32)],
        compiler_params=pltpu.CompilerParams(
            dimension_semantics=("parallel", "parallel"),
            vmem_limit_bytes=_vmem_limit_bytes()),
    )(x, qkv, blk['wo'], blk['bo'])


# ---------------------------------------------------------------------------
# kernel: ln_2 + MLP (QuickGELU) + residual, gridded over (batch, L-tiles, hidden-tiles)
# wfc streamed as [D, tn] N-tiles, wpr as [tn, D] K-tiles into an f32 VMEM accumulator.
# ---------------------------------------------------------------------------
def _mlp_kernel(x_ref, ln2g_ref, ln2b_ref, wfc_ref, bfc_ref, wpr_ref, bpr_ref,
                o_ref, acc_ref, h2_ref):
    bf16 = jnp.bfloat16
    j = pl.program_id(2)

    @pl.when(j == 0)
    def _():
        h2_ref[...] = _layer_norm(x_ref[...], ln2g_ref[...], ln2b_ref[...]).astype(bf16)
        acc_ref[...] = jnp.zeros_like(acc_ref)

    u = jnp.dot(h2_ref[...], wfc_ref[...],
                preferred_element_type=jnp.float32) + bfc_ref[...]     # [tq, tn]
    u = u * jax.nn.sigmoid(1.702 * u)                                  # QuickGELU
    acc_ref[...] += jnp.dot(u.astype(bf16), wpr_ref[...],
                            preferred_element_type=jnp.float32)

    @pl.when(j == pl.num_programs(2) - 1)
    def _():
        o_ref[...] = x_ref[...] + acc_ref[...] + bpr_ref[...]          # residual 2


def mlp_block(x, blk, tq):
    B, L_pad, D = x.shape
    nL = L_pad // tq
    hidden = blk['wfc'].shape[1]
    tn = _fit_tile(hidden, _tile_targets()[1])
    nH = hidden // tn
    return pl.pallas_call(
        _mlp_kernel,
        out_shape=jax.ShapeDtypeStruct((B, L_pad, D), jnp.float32),
        grid=(B, nL, nH),
        in_specs=[pl.BlockSpec((None, tq, D), lambda b, l, j: (b, l, 0)),
                  _const_spec(blk['ln2_g']), _const_spec(blk['ln2_b']),
                  pl.BlockSpec((D, tn), lambda b, l, j: (0, j)),
                  pl.BlockSpec((1, tn), lambda b, l, j: (0, j)),
                  pl.BlockSpec((tn, D), lambda b, l, j: (j, 0)),
                  _const_spec(blk['bpr'])],
        out_specs=pl.BlockSpec((None, tq, D), lambda b, l, j: (b, l, 0)),
        scratch_shapes=[pltpu.VMEM((tq, D), jnp.float32),
                        pltpu.VMEM((tq, D), jnp.bfloat16)],
        compiler_params=pltpu.CompilerParams(
            dimension_semantics=("parallel", "parallel", "arbitrary"),
            vmem_limit_bytes=_vmem_limit_bytes()),
    )(x, blk['ln2_g'], blk['ln2_b'], blk['wfc'], blk['bfc'], blk['wpr'], blk['bpr'])


# ---------------------------------------------------------------------------
# Conv2d(kernel=stride=patch, bias=False) == patch extraction + GEMM
# ---------------------------------------------------------------------------
def patch_embed(x, conv_w):
    B, C, H, W = x.shape
    D, _, p, _ = conv_w.shape
    gh, gw = H // p, W // p
    patches = (x.reshape(B, C, gh, p, gw, p)
                 .transpose(0, 2, 4, 1, 3, 5)                # [B, gh, gw, C, p, p]
                 .reshape(B * gh * gw, C * p * p))
    w = conv_w.reshape(D, C * p * p).T                       # [C*p*p, D]
    K = C * p * p
    K_pad = ((K + 127) // 128) * 128                         # lane-align the contraction dim
    if K_pad != K:
        patches = jnp.pad(patches, ((0, 0), (0, K_pad - K)))
        w = jnp.pad(w, ((0, K_pad - K), (0, 0)))
    out = pallas_matmul(patches.astype(jnp.bfloat16), w.astype(jnp.bfloat16))
    return out.reshape(B, gh * gw, D)                        # [B, P, D] f32


# ---------------------------------------------------------------------------
# full forward
# ---------------------------------------------------------------------------
def vit_forward(x, params):
    feats = patch_embed(x, params['conv1_w'])                # [B, P, D]
    B, P, D = feats.shape
    L = P + 1
    cls = jnp.broadcast_to(params['class_embedding'][None, None, :], (B, 1, D))
    tokens = jnp.concatenate([cls, feats], axis=1)           # [B, L, D] (class token first)

    tq, L_pad = _seq_tile(L)
    pos = params['pos_embedding']
    if L_pad != L:                                           # pad seq to a tile multiple
        tokens = jnp.pad(tokens, ((0, 0), (0, L_pad - L), (0, 0)))
        pos = jnp.pad(pos, ((0, L_pad - L), (0, 0)))

    blocks = params['blocks']
    n_head = params['n_head']
    # first layer: pos-embed add + ln_pre fused into the ln_1+QKV kernel
    x_res, qkv = qkv_proj(tokens, blocks[0], tq,
                          pre=(pos, params['ln_pre_g'], params['ln_pre_b']))
    for i, blk in enumerate(blocks):
        if i > 0:
            qkv = qkv_proj(x_res, blk, tq)
        x_res = attention(x_res, qkv, blk, n_head, tq, L)
        x_res = mlp_block(x_res, blk, tq)

    cls_tok = x_res[:, 0, :]                                 # [B, D]
    # ln_post + [B, D] @ [D, out] projection in plain XLA (tiny op; Pallas kernel here is
    # launch/DMA-overhead bound -- review item).
    y = _layer_norm(cls_tok, params['ln_post_g'], params['ln_post_b'])
    return jnp.dot(y, params['proj'])


# ---------------------------------------------------------------------------
# deterministic parameter init (shapes follow the PyTorch module __init__);
# weights feeding the MXU stored in bf16, biases / LN params / embeddings in f32.
# ---------------------------------------------------------------------------
def init_params(key, input_resolution, patch_size, width, layers, heads, output_dim):
    D, H = width, heads
    assert D % H == 0
    head_dim = D // H
    L = (input_resolution // patch_size) ** 2 + 1
    scale = D ** -0.5
    attn_scale = head_dim ** -0.5
    f32, bf16 = jnp.float32, jnp.bfloat16
    ks = iter(jax.random.split(key, 4 + layers * 12))

    params = {
        'n_head': H,
        'conv1_w': 0.02 * jax.random.normal(next(ks), (D, 3, patch_size, patch_size), f32),
        'class_embedding': scale * jax.random.normal(next(ks), (D,), f32),
        'pos_embedding': scale * jax.random.normal(next(ks), (L, D), f32),
        'ln_pre_g': jnp.ones((1, D), f32), 'ln_pre_b': jnp.zeros((1, D), f32),
        'ln_post_g': jnp.ones((1, D), f32), 'ln_post_b': jnp.zeros((1, D), f32),
        'proj': scale * jax.random.normal(next(ks), (D, output_dim), f32),
        'blocks': [],
    }
    for _ in range(layers):
        wq = scale * jax.random.normal(next(ks), (D, D), f32)
        wk = scale * jax.random.normal(next(ks), (D, D), f32)
        wv = scale * jax.random.normal(next(ks), (D, D), f32)
        bq = 0.01 * jax.random.normal(next(ks), (1, D), f32)
        bk = 0.01 * jax.random.normal(next(ks), (1, D), f32)
        bv = 0.01 * jax.random.normal(next(ks), (1, D), f32)
        wo = scale * jax.random.normal(next(ks), (D, D), f32)
        wfc = scale * jax.random.normal(next(ks), (D, 4 * D), f32)
        wpr = scale * jax.random.normal(next(ks), (4 * D, D), f32)
        blk = {
            # fused in-projection [Wq*s | Wk | Wv]: the attention 1/sqrt(head_dim) scale is
            # folded into the Wq columns and the bq slice (PyTorch scales q after the bias).
            'wqkv': jnp.concatenate([wq * attn_scale, wk, wv], axis=1).astype(bf16),
            'bqkv': jnp.concatenate([bq * attn_scale, bk, bv], axis=1),
            'wo': wo.astype(bf16), 'bo': jnp.zeros((1, D), f32),
            'ln1_g': jnp.ones((1, D), f32), 'ln1_b': jnp.zeros((1, D), f32),
            'ln2_g': jnp.ones((1, D), f32), 'ln2_b': jnp.zeros((1, D), f32),
            'wfc': wfc.astype(bf16), 'bfc': 0.01 * jax.random.normal(next(ks), (1, 4 * D), f32),
            'wpr': wpr.astype(bf16), 'bpr': 0.01 * jax.random.normal(next(ks), (1, D), f32),
        }
        params['blocks'].append(blk)
    return params


if __name__ == "__main__":
    input_resolution, patch_size = 16, 8
    width, layers, heads, output_dim = 32, 2, 4, 16
    batch = 2

    key = jax.random.PRNGKey(0)
    pkey, xkey = jax.random.split(key)
    params = init_params(pkey, input_resolution, patch_size, width, layers, heads, output_dim)
    x = jax.random.normal(xkey, (batch, 3, input_resolution, input_resolution), jnp.float32)

    out = vit_forward(x, params)
    out = jax.block_until_ready(out)
    assert out.shape == (batch, output_dim), out.shape
    assert bool(jnp.all(jnp.isfinite(out)))
    print("KERNEL_OK")
</pallas_src>

<mosaic_0001>
module attributes {stable_mosaic.version = 11 : i64} {
  func.func @_matmul_kernel(%arg0: i32, %arg1: i32, %arg2: i32, %arg3: memref<8x256xbf16, #tpu.memory_space<vmem>>, %arg4: memref<256x32xbf16, #tpu.memory_space<vmem>>, %arg5: memref<8x32xf32, #tpu.memory_space<vmem>>, %arg6: memref<8x32xf32, #tpu.memory_space<vmem>>) attributes {dimension_semantics = [#tpu.dimension_semantics<parallel>, #tpu.dimension_semantics<parallel>, #tpu.dimension_semantics<arbitrary>], iteration_bounds = array<i64: 1, 1, 1>, scalar_prefetch = 0 : i64, scratch_operands = 1 : i64, tpu.core_type = #tpu.core_type<tc>, window_params = [{transform_indices = @transform_0, window_bounds = array<i64: 8, 256>}, {transform_indices = @transform_1, window_bounds = array<i64: 256, 32>}, {transform_indices = @transform_2, window_bounds = array<i64: 8, 32>}]} {
    %c0_i32 = arith.constant 0 : i32
    %0 = arith.cmpi eq, %arg2, %c0_i32 : i32
    %1 = arith.extui %0 : i1 to i32
    %c0_i32_0 = arith.constant 0 : i32
    %2 = arith.cmpi ne, %1, %c0_i32_0 : i32
    scf.if %2 {
      %cst_12 = arith.constant 0.000000e+00 : f32
      %11 = vector.broadcast %cst_12 : f32 to vector<8x32xf32>
      %c0_13 = arith.constant 0 : index
      %c0_14 = arith.constant 0 : index
      %12 = vector.load %arg6[%c0_13, %c0_14] : memref<8x32xf32, #tpu.memory_space<vmem>>, vector<8x32xf32>
      tpu.vector_store %arg6[%c0_13, %c0_14], %11 {strides = array<i32>} : memref<8x32xf32, #tpu.memory_space<vmem>>, vector<8x32xf32>,
    } else {
    }
    %c0 = arith.constant 0 : index
    %c0_1 = arith.constant 0 : index
    %3 = vector.load %arg6[%c0, %c0_1] : memref<8x32xf32, #tpu.memory_space<vmem>>, vector<8x32xf32>
    %c0_2 = arith.constant 0 : index
    %c0_3 = arith.constant 0 : index
    %4 = vector.load %arg3[%c0_2, %c0_3] : memref<8x256xbf16, #tpu.memory_space<vmem>>, vector<8x256xbf16>
    %c0_4 = arith.constant 0 : index
    %c0_5 = arith.constant 0 : index
    %5 = vector.load %arg4[%c0_4, %c0_5] : memref<256x32xbf16, #tpu.memory_space<vmem>>, vector<256x32xbf16>
    %cst = arith.constant dense<0.000000e+00> : vector<8x32xf32>
    %6 = tpu.matmul %4, %5, %cst {dimension_numbers = #tpu.dot_dimension_numbers<[1], [0], [0], [1], [0, 0, 1, 1], [], []>} : vector<8x256xbf16>, vector<256x32xbf16>, vector<8x32xf32> -> vector<8x32xf32>
    %7 = arith.addf %3, %6 : vector<8x32xf32>
    %c0_6 = arith.constant 0 : index
    %c0_7 = arith.constant 0 : index
    %8 = vector.load %arg6[%c0_6, %c0_7] : memref<8x32xf32, #tpu.memory_space<vmem>>, vector<8x32xf32>
    tpu.vector_store %arg6[%c0_6, %c0_7], %7 {strides = array<i32>} : memref<8x32xf32, #tpu.memory_space<vmem>>, vector<8x32xf32>,
    %c0_8 = arith.constant 0 : index
    %c0_9 = arith.constant 0 : index
    %9 = vector.load %arg6[%c0_8, %c0_9] : memref<8x32xf32, #tpu.memory_space<vmem>>, vector<8x32xf32>
    %c0_10 = arith.constant 0 : index
    %c0_11 = arith.constant 0 : index
    %10 = vector.load %arg5[%c0_10, %c0_11] : memref<8x32xf32, #tpu.memory_space<vmem>>, vector<8x32xf32>
    tpu.vector_store %arg5[%c0_10, %c0_11], %9 {strides = array<i32>} : memref<8x32xf32, #tpu.memory_space<vmem>>, vector<8x32xf32>,
    return
  }
  func.func @transform_0(%arg0: i32, %arg1: i32, %arg2: i32) -> (i32, i32) {
    %c0_i32 = arith.constant 0 : i32
    return %arg0, %arg2 : i32, i32
  }
  func.func @transform_1(%arg0: i32, %arg1: i32, %arg2: i32) -> (i32, i32) {
    %c0_i32 = arith.constant 0 : i32
    return %arg2, %arg1 : i32, i32
  }
  func.func @transform_2(%arg0: i32, %arg1: i32, %arg2: i32) -> (i32, i32) {
    %c0_i32 = arith.constant 0 : i32
    return %arg0, %arg1 : i32, i32
  }
}

</mosaic_0001>

<bundles_post_ra>
// kernel: tpu_custom_call.1
= control target key start
LH: loop header
LB: loop body
LE: loop exit
PB: predicated region body
PF: predicated region fallthrough
CT: control target
= control target key end

     0   :  { %s384_s0 = inlined_call_operand.vmem [shape: bf16[8,256], index: 0, kind: input, shape index: {}]   ;;  %s385_s1 = inlined_call_operand.vmem [shape: bf16[256,32], index: 1, kind: input, shape index: {}]   ;;  %s386_s2 = inlined_call_operand.hbm [shape: f32[8,32], index: 2, kind: output, shape index: {}]  }
   0x1   :  { %v273_v0 = vld [vmem:[%s385_s1 + $0x38] sm:$0xff]  ;;  %v272_v2 = vld [vmem:[%s385_s1 + $0x30] sm:$0xff] }
   0x2   :  { %v281_v1 = vld [vmem:[%s385_s1 + $0x78] sm:$0xff]  ;;  %155 = vmatpush.bf16.msra.mxu0 %v273_v0  ;;  %v280_v3 = vld [vmem:[%s385_s1 + $0x70] sm:$0xff] }
   0x3   :  { %168 = vmatpush.bf16.msra.mxu1 %v281_v1 }
   0x4   :  { %7 = vsyncpa [#allocation4], 0  ;;  %v271_v4 = vld [vmem:[%s385_s1 + $0x28] sm:$0xff]  ;;  %v270_v6 = vld [vmem:[%s385_s1 + $0x20] sm:$0xff]  ;;  %vm16_vm0 = vcmask 261120   ;;  %v310_v21 = vmov 0.0  }
   0x5   :  { %v279_v5 = vld [vmem:[%s385_s1 + $0x68] sm:$0xff]  ;;  %v278_v7 = vld [vmem:[%s385_s1 + $0x60] sm:$0xff]  ;;  %v269_v8 = vld [vmem:[%s385_s1 + $0x18] sm:$0xff]  ;;  %17 = vst.msk [vmem:[#allocation2] sm:$0xff] %vm16_vm0, %v310_v21  ;;  %s193_s17 = sshll.u32 %s386_s2, 4  ;;  %s194_s17 = int_to_ptr.hbm [resolvable:$true] %s193_s17 }
   0x6   :  { %156 = vmatpush.bf16.msra.mxu0 %v272_v2  ;;  %v277_v9 = vld [vmem:[%s385_s1 + $0x58] sm:$0xff]  ;;  %v268_v10 = vld [vmem:[%s385_s1 + $0x10] sm:$0xff]  ;;  %v267_v12 = vld [vmem:[%s385_s1 + $0x8] sm:$0xff] }
   0x7   :  { %169 = vmatpush.bf16.msra.mxu1 %v280_v3  ;;  %v276_v11 = vld [vmem:[%s385_s1 + $0x50] sm:$0xff]  ;;  %v275_v13 = vld [vmem:[%s385_s1 + $0x48] sm:$0xff]  ;;  %v19_v14 = vld [vmem:[%s384_s0] sm:$0xff]  ;;  %s311_s0 = smov [#allocation3]  }
   0x8   :  { %v53_v15 = vunpack.c.l.b16 %v19_v14  ;;  %v54_v16 = vunpack.c.h.b16 %v19_v14  ;;  %v266_v17 = vld [vmem:[%s385_s1] sm:$0xff] }
   0x9   :  { %v274_v18 = vld [vmem:[%s385_s1 + $0x40] sm:$0xff]  ;;  %s191_s1 = sshll.u32 %s311_s0, 4  ;;  %s192_s1 = int_to_ptr.vmem [resolvable:$true] %s191_s1 }
   0xa   :  { %157 = vmatpush.bf16.msra.mxu0 %v271_v4  ;;  %v55_v19 = vpack.c.b16 %v53_v15, %v53_v15  ;;  %v56_v20 = vpack.c.b16 %v54_v16, %v54_v16 }
   0xb   :  { %170 = vmatpush.bf16.msra.mxu1 %v279_v5 }
   0xc   :  { %v18_v23 = vld [vmem:[#allocation2] sm:$0xff] }
   0xe   :  { %158 = vmatpush.bf16.msra.mxu0 %v270_v6 }
   0xf   :  { %171 = vmatpush.bf16.msra.mxu1 %v278_v7 }
  0x12   :  { %159 = vmatpush.bf16.msra.mxu0 %v269_v8 }
  0x13   :  { %172 = vmatpush.bf16.msra.mxu1 %v277_v9 }
  0x16   :  { %160 = vmatpush.bf16.msra.mxu0 %v268_v10 }
  0x17   :  { %173 = vmatpush.bf16.msra.mxu1 %v276_v11 }
  0x1a   :  { %161 = vmatpush.bf16.msra.mxu0 %v267_v12 }
  0x1b   :  { %174 = vmatpush.bf16.msra.mxu1 %v275_v13 }
  0x1e   :  { %162 = vmatpush.bf16.msra.mxu0 %v266_v17 }
  0x1f   :  { %175 = vmatpush.bf16.msra.mxu1 %v274_v18 }
  0x21   :  { %163 = vmatmul.bf16.vlgmr.msra.gmra.mxu0 %v55_v19 }
  0x22   :  { %176 = vmatmul.bf16.vlgmr.msra.gmra.mxu1 %v56_v20 }
  0x9e   :  { %v164_v22 = vpop.f32.mrf.mxu0 }
  0x9f   :  { %v177_v24 = vpop.f32.mrf.mxu1 }
  0xa0   :  { %v178_v25 = vadd.f32 %v177_v24, %v164_v22 }
  0xa2   :  { %v181_v26 = vadd.f32 %v178_v25, %v18_v23 }
  0xa4   :  { %183 = vst.msk [vmem:[#allocation2] sm:$0xff] %vm16_vm0, %v181_v26 }
  0xa6   :  { %v166_v27 = vpop.f32.mrf.mxu0 }
  0xa7   :  { %v179_v28 = vpop.f32.mrf.mxu1 }
  0xab   :  { %v184_v29 = vld [vmem:[#allocation2] sm:$0xff] }
  0xac   :  { %185 = vst.msk [vmem:[#allocation3] sm:$0xff] %vm16_vm0, %v184_v29 }
  0xad   :  { %196 = dma.vmem_to_hbm [thread:$0]  %s192_s1, 128, %s194_s17, [#allocation4]  }
  0xae   :  { %308 = dma.done.wait [#allocation4], 128  }
  0xaf   :  { %309 = vsyncadd [#allocation4], 4294967168 }
  0xb0   :  { %201 = vsyncpa [#allocation4], 1 }

</bundles_post_ra>
